<compile_context>
chip_gen: v7x
topology: tpu7x:2x2x1
jax: 0.10.0
libtpu: 0.0.40
codegen_flags: <defaults>
</compile_context>

<pallas_src>
import jax
import jax.numpy as jnp
from jax import lax
from jax.experimental import pallas as pl
from jax.experimental.pallas import tpu as pltpu


def _sobel_kernel(x_ref, o_ref):
    # x_ref: (nb, 3, H, W) raw (unpadded) input block
    # o_ref: (nb, H, W)    |Gx| + |Gy| output block
    nb, _, H, W = x_ref.shape

    # Identical 3x3 weights on every input channel -> sum channels first, then
    # fold the batch axis into the sublane axis (2-D arrays for the rolls).
    xs = (x_ref[:, 0, :, :].astype(jnp.float32)
          + x_ref[:, 1, :, :].astype(jnp.float32)
          + x_ref[:, 2, :, :].astype(jnp.float32)).reshape(nb * H, W)

    # Zero-padding halo masks; "row within image" = global_row % H because the
    # batch axis is folded into the sublane axis.
    row = lax.broadcasted_iota(jnp.int32, (nb * H, W), 0) % H
    col = lax.broadcasted_iota(jnp.int32, (nb * H, W), 1)
    zero = jnp.zeros_like(xs)

    # Row (sublane) halo: up[r] = xs[r-1], dn[r] = xs[r+1], zero at image edges.
    up = jnp.where(row == 0, zero, pltpu.roll(xs, shift=1, axis=0))
    dn = jnp.where(row == H - 1, zero, pltpu.roll(xs, shift=nb * H - 1, axis=0))

    # Separable vertical passes.
    a = up + 2.0 * xs + dn        # vertical [1, 2, 1]
    b = up - dn                   # vertical [1, 0, -1]

    # Column (lane) halo.
    a_l = jnp.where(col == 0, zero, pltpu.roll(a, shift=1, axis=1))
    a_r = jnp.where(col == W - 1, zero, pltpu.roll(a, shift=W - 1, axis=1))
    b_l = jnp.where(col == 0, zero, pltpu.roll(b, shift=1, axis=1))
    b_r = jnp.where(col == W - 1, zero, pltpu.roll(b, shift=W - 1, axis=1))

    gx = a_l - a_r                # horizontal [1, 0, -1] applied to a
    gy = b_l + 2.0 * b + b_r      # horizontal [1, 2, 1] applied to b

    o_ref[...] = (jnp.abs(gx) + jnp.abs(gy)).reshape(nb, H, W).astype(o_ref.dtype)


def sobel_forward(x, *, vmem_budget_bytes=None, vmem_limit_bytes=None):
    """x: (N, 3, H, W); returns (N, 1, H, W) = |Sobel_x(x)| + |Sobel_y(x)|."""
    N, C, H, W = x.shape
    if C != 3:
        raise ValueError("Sobel module expects 3 input channels")

    # Chip VMEM capacity (conservative v7x-sized fallback if the query fails).
    try:
        vmem_cap = int(pltpu.get_tpu_info().vmem_capacity_bytes)
    except Exception:
        vmem_cap = 64 * 1024 * 1024

    if vmem_budget_bytes is None:
        # Block budget ~ 1/4 of physical VMEM: 32 MiB on 128-MiB v5e/v6e,
        # 16 MiB on 64-MiB v7x.
        vmem_budget_bytes = vmem_cap // 4

    itemsize = jnp.dtype(x.dtype).itemsize
    # Per-batch-element VMEM: double-buffered in/out blocks + live f32
    # temporaries inside the kernel (xs/up/dn/a/b/shifted slices/gx/gy),
    # conservatively ~10 full-size f32 slabs.
    per_n = 2 * (3 * H * W + H * W) * itemsize + 10 * H * W * 4

    nb = max(1, min(N, vmem_budget_bytes // per_n))
    grid = (pl.cdiv(N, nb),)   # ragged tail block is masked by Pallas
    # TODO(synk): add H-row tiling (2-row halo) so a single very large image
    # does not have to fit in VMEM as one block (matters first on v7x).

    if vmem_limit_bytes is None:
        vmem_limit_bytes = int(min(vmem_cap * 3 // 4,
                                   max(32 * 1024 * 1024, nb * per_n + (8 << 20))))

    out = pl.pallas_call(
        _sobel_kernel,
        out_shape=jax.ShapeDtypeStruct((N, H, W), x.dtype),
        grid=grid,
        in_specs=[pl.BlockSpec((nb, 3, H, W), lambda n: (n, 0, 0, 0))],
        out_specs=pl.BlockSpec((nb, H, W), lambda n: (n, 0, 0)),
        compiler_params=pltpu.CompilerParams(
            dimension_semantics=("parallel",),
            vmem_limit_bytes=vmem_limit_bytes,
        ),
    )(x)

    return out.reshape(N, 1, H, W)


def sobel_reference(x):
    """Pure-JAX reference matching the PyTorch Sobel forward (real convs)."""
    kx = jnp.array([[1.0, 0.0, -1.0],
                    [2.0, 0.0, -2.0],
                    [1.0, 0.0, -1.0]], dtype=jnp.float32)
    ky = jnp.array([[1.0, 2.0, 1.0],
                    [0.0, 0.0, 0.0],
                    [-1.0, -2.0, -1.0]], dtype=jnp.float32)
    wx = jnp.broadcast_to(kx, (1, 3, 3, 3))
    wy = jnp.broadcast_to(ky, (1, 3, 3, 3))
    dn = ('NCHW', 'OIHW', 'NCHW')
    ex = lax.conv_general_dilated(x, wx, (1, 1), [(1, 1), (1, 1)],
                                  dimension_numbers=dn)
    ey = lax.conv_general_dilated(x, wy, (1, 1), [(1, 1), (1, 1)],
                                  dimension_numbers=dn)
    return jnp.abs(ex) + jnp.abs(ey)


if __name__ == "__main__":
    key = jax.random.PRNGKey(0)

    # Small demo shape implied by the module (Sobel requires 3 input channels).
    N, C, H, W = 2, 3, 16, 16
    x = jax.random.normal(key, (N, C, H, W), dtype=jnp.float32)

    out = jax.block_until_ready(sobel_forward(x))
    ref = sobel_reference(x)
    assert out.shape == (N, 1, H, W)
    assert jnp.allclose(out, ref, atol=1e-4, rtol=1e-4), "mismatch vs reference"

    # Exercise the cdiv / ragged-tail path (N not a multiple of the batch block):
    # a small budget forces nb=2 with N=3 -> grid of 2 with a masked tail block.
    x3 = jax.random.normal(jax.random.PRNGKey(0), (3, C, H, W), dtype=jnp.float32)
    out3 = jax.block_until_ready(sobel_forward(x3, vmem_budget_bytes=40 * 1024))
    ref3 = sobel_reference(x3)
    assert out3.shape == (3, 1, H, W)
    assert jnp.allclose(out3, ref3, atol=1e-4, rtol=1e-4), "mismatch (ragged grid)"

    print("KERNEL_OK")
</pallas_src>

<mosaic_0001>
module attributes {stable_mosaic.version = 11 : i64} {
  func.func @_sobel_kernel(%arg0: i32, %arg1: memref<2x3x16x16xf32, #tpu.memory_space<vmem>>, %arg2: memref<2x16x16xf32, #tpu.memory_space<vmem>>) attributes {dimension_semantics = [#tpu.dimension_semantics<parallel>], iteration_bounds = array<i64: 1>, scalar_prefetch = 0 : i64, scratch_operands = 0 : i64, tpu.core_type = #tpu.core_type<tc>, window_params = [{transform_indices = @transform_0, window_bounds = array<i64: 2, 3, 16, 16>}, {transform_indices = @transform_1, window_bounds = array<i64: 2, 16, 16>}]} {
    %c0 = arith.constant 0 : index
    %c0_0 = arith.constant 0 : index
    %c0_1 = arith.constant 0 : index
    %c0_2 = arith.constant 0 : index
    %0 = vector.load %arg1[%c0, %c0_0, %c0_1, %c0_2] : memref<2x3x16x16xf32, #tpu.memory_space<vmem>>, vector<2x1x16x16xf32>
    %1 = vector.shape_cast %0 : vector<2x1x16x16xf32> to vector<2x16x16xf32>
    %c0_3 = arith.constant 0 : index
    %c1 = arith.constant 1 : index
    %c0_4 = arith.constant 0 : index
    %c0_5 = arith.constant 0 : index
    %2 = vector.load %arg1[%c0_3, %c1, %c0_4, %c0_5] : memref<2x3x16x16xf32, #tpu.memory_space<vmem>>, vector<2x1x16x16xf32>
    %3 = vector.shape_cast %2 : vector<2x1x16x16xf32> to vector<2x16x16xf32>
    %4 = arith.addf %1, %3 : vector<2x16x16xf32>
    %c0_6 = arith.constant 0 : index
    %c2 = arith.constant 2 : index
    %c0_7 = arith.constant 0 : index
    %c0_8 = arith.constant 0 : index
    %5 = vector.load %arg1[%c0_6, %c2, %c0_7, %c0_8] : memref<2x3x16x16xf32, #tpu.memory_space<vmem>>, vector<2x1x16x16xf32>
    %6 = vector.shape_cast %5 : vector<2x1x16x16xf32> to vector<2x16x16xf32>
    %7 = arith.addf %4, %6 : vector<2x16x16xf32>
    %8 = vector.shape_cast %7 : vector<2x16x16xf32> to vector<32x16xf32>
    %9 = tpu.iota {dimensions = array<i32: 0>} : vector<32x16xi32>
    %c16_i32 = arith.constant 16 : i32
    %c0_i32 = arith.constant 0 : i32
    %10 = arith.cmpi eq, %c16_i32, %c0_i32 : i32
    %c1_i32 = arith.constant 1 : i32
    %11 = arith.select %10, %c1_i32, %c16_i32 : i32
    %12 = vector.broadcast %11 : i32 to vector<32x16xi32>
    %13 = arith.remsi %9, %12 : vector<32x16xi32>
    %c0_i32_9 = arith.constant 0 : i32
    %14 = vector.broadcast %c0_i32_9 : i32 to vector<32x16xi32>
    %15 = arith.cmpi ne, %13, %14 : vector<32x16xi32>
    %c0_i32_10 = arith.constant 0 : i32
    %16 = vector.broadcast %c0_i32_10 : i32 to vector<32x16xi32>
    %17 = arith.cmpi slt, %13, %16 : vector<32x16xi32>
    %c0_i32_11 = arith.constant 0 : i32
    %18 = arith.cmpi slt, %11, %c0_i32_11 : i32
    %19 = vector.broadcast %18 : i1 to vector<32x16xi1>
    %20 = vector.broadcast %19 : vector<32x16xi1> to vector<32x16xi1>
    %21 = arith.xori %17, %20 : vector<32x16xi1>
    %22 = arith.andi %21, %15 : vector<32x16xi1>
    %23 = vector.broadcast %11 : i32 to vector<32x16xi32>
    %24 = arith.addi %13, %23 : vector<32x16xi32>
    %25 = arith.select %22, %24, %13 : vector<32x16xi1>, vector<32x16xi32>
    %26 = tpu.iota {dimensions = array<i32: 1>} : vector<32x16xi32>
    %cst = arith.constant 0.000000e+00 : f32
    %27 = vector.broadcast %cst : f32 to vector<32x16xf32>
    %c0_i32_12 = arith.constant 0 : i32
    %28 = vector.broadcast %c0_i32_12 : i32 to vector<32x16xi32>
    %29 = arith.cmpi eq, %25, %28 : vector<32x16xi32>
    %c1_i32_13 = arith.constant 1 : i32
    %30 = tpu.dynamic_rotate %8 by %c1_i32_13 dim 0 : vector<32x16xf32>, i32 -> vector<32x16xf32>
    %31 = arith.select %29, %27, %30 : vector<32x16xi1>, vector<32x16xf32>
    %c15_i32 = arith.constant 15 : i32
    %32 = vector.broadcast %c15_i32 : i32 to vector<32x16xi32>
    %33 = arith.cmpi eq, %25, %32 : vector<32x16xi32>
    %c31_i32 = arith.constant 31 : i32
    %34 = tpu.dynamic_rotate %8 by %c31_i32 dim 0 : vector<32x16xf32>, i32 -> vector<32x16xf32>
    %35 = arith.select %33, %27, %34 : vector<32x16xi1>, vector<32x16xf32>
    %cst_14 = arith.constant 2.000000e+00 : f32
    %36 = vector.broadcast %cst_14 : f32 to vector<32x16xf32>
    %37 = arith.mulf %36, %8 : vector<32x16xf32>
    %38 = arith.addf %31, %37 : vector<32x16xf32>
    %39 = arith.addf %38, %35 : vector<32x16xf32>
    %40 = arith.subf %31, %35 : vector<32x16xf32>
    %c0_i32_15 = arith.constant 0 : i32
    %41 = vector.broadcast %c0_i32_15 : i32 to vector<32x16xi32>
    %42 = arith.cmpi eq, %26, %41 : vector<32x16xi32>
    %c1_i32_16 = arith.constant 1 : i32
    %43 = tpu.dynamic_rotate %39 by %c1_i32_16 dim 1 : vector<32x16xf32>, i32 -> vector<32x16xf32>
    %44 = arith.select %42, %27, %43 : vector<32x16xi1>, vector<32x16xf32>
    %c15_i32_17 = arith.constant 15 : i32
    %45 = vector.broadcast %c15_i32_17 : i32 to vector<32x16xi32>
    %46 = arith.cmpi eq, %26, %45 : vector<32x16xi32>
    %c15_i32_18 = arith.constant 15 : i32
    %47 = tpu.dynamic_rotate %39 by %c15_i32_18 dim 1 : vector<32x16xf32>, i32 -> vector<32x16xf32>
    %48 = arith.select %46, %27, %47 : vector<32x16xi1>, vector<32x16xf32>
    %c0_i32_19 = arith.constant 0 : i32
    %49 = vector.broadcast %c0_i32_19 : i32 to vector<32x16xi32>
    %50 = arith.cmpi eq, %26, %49 : vector<32x16xi32>
    %c1_i32_20 = arith.constant 1 : i32
    %51 = tpu.dynamic_rotate %40 by %c1_i32_20 dim 1 : vector<32x16xf32>, i32 -> vector<32x16xf32>
    %52 = arith.select %50, %27, %51 : vector<32x16xi1>, vector<32x16xf32>
    %c15_i32_21 = arith.constant 15 : i32
    %53 = vector.broadcast %c15_i32_21 : i32 to vector<32x16xi32>
    %54 = arith.cmpi eq, %26, %53 : vector<32x16xi32>
    %c15_i32_22 = arith.constant 15 : i32
    %55 = tpu.dynamic_rotate %40 by %c15_i32_22 dim 1 : vector<32x16xf32>, i32 -> vector<32x16xf32>
    %56 = arith.select %54, %27, %55 : vector<32x16xi1>, vector<32x16xf32>
    %57 = arith.subf %44, %48 : vector<32x16xf32>
    %cst_23 = arith.constant 2.000000e+00 : f32
    %58 = vector.broadcast %cst_23 : f32 to vector<32x16xf32>
    %59 = arith.mulf %58, %40 : vector<32x16xf32>
    %60 = arith.addf %52, %59 : vector<32x16xf32>
    %61 = arith.addf %60, %56 : vector<32x16xf32>
    %62 = math.absf %57 : vector<32x16xf32>
    %63 = math.absf %61 : vector<32x16xf32>
    %64 = arith.addf %62, %63 : vector<32x16xf32>
    %65 = vector.shape_cast %64 : vector<32x16xf32> to vector<2x16x16xf32>
    %c0_24 = arith.constant 0 : index
    %c0_25 = arith.constant 0 : index
    %c0_26 = arith.constant 0 : index
    %66 = vector.load %arg2[%c0_24, %c0_25, %c0_26] : memref<2x16x16xf32, #tpu.memory_space<vmem>>, vector<2x16x16xf32>
    tpu.vector_store %arg2[%c0_24, %c0_25, %c0_26], %65 {strides = array<i32>} : memref<2x16x16xf32, #tpu.memory_space<vmem>>, vector<2x16x16xf32>,
    return
  }
  func.func @transform_0(%arg0: i32) -> (i32, i32, i32, i32) {
    %c0_i32 = arith.constant 0 : i32
    %c0_i32_0 = arith.constant 0 : i32
    %c0_i32_1 = arith.constant 0 : i32
    %c0_i32_2 = arith.constant 0 : i32
    return %arg0, %c0_i32, %c0_i32_0, %c0_i32_1 : i32, i32, i32, i32
  }
  func.func @transform_1(%arg0: i32) -> (i32, i32, i32) {
    %c0_i32 = arith.constant 0 : i32
    %c0_i32_0 = arith.constant 0 : i32
    %c0_i32_1 = arith.constant 0 : i32
    return %arg0, %c0_i32, %c0_i32_0 : i32, i32, i32
  }
}

</mosaic_0001>

<bundles_post_ra>
// kernel: tpu_custom_call.1
= control target key start
LH: loop header
LB: loop body
LE: loop exit
PB: predicated region body
PF: predicated region fallthrough
CT: control target
= control target key end

     0   :  { %6 = vsyncpa [#allocation3], 0  ;;  %s535_s0 = inlined_call_operand.hbm [shape: f32[2,3,16,16], index: 0, kind: input, shape index: {}]   ;;  %s536_s1 = inlined_call_operand.hbm [shape: f32[2,16,16], index: 1, kind: output, shape index: {}]  }
   0x1   :  { %7 = vsyncpa [#allocation4], 0  ;;  %s378_s6 = smov [#allocation2]   ;;  %s330_s10 = scalar_lea.hbm %s535_s0, 1536 }
   0x2   :  { %s13_s7 = sshll.u32 %s378_s6, 4  ;;  %p331_p0 = scmp.ne.s32.totalorder %s535_s0, %s330_s10  ;;  %s14_s7 = int_to_ptr.vmem [resolvable:$true] %s13_s7 }
   0x3   :  { %p334_p1 = scmp.lt.u32.totalorder %s330_s10, %s535_s0 }
   0x5   :  { %p336_p2 = pnand %p334_p1, %p331_p0 }
   0x7   :  { %339 = shalt.err (!%p336_p2)
}
   0x8   :  { %s340_s15 = scalar_lea.vmem %s14_s7, 1536  ;;  %p345_p4 = scmp.lt.s32.totalorder %s14_s7, %s14_s7 }
   0x9   :  { %p341_p3 = scmp.ne.s32.totalorder %s14_s7, %s340_s15  ;;  %p346_p5 = scmp.lt.s32.totalorder %s340_s15, %s340_s15 }
   0xb   :  { %p347_p6 = por %p346_p5, %p345_p4 }
   0xd   :  { %p348_p7 = pnand %p347_p6, %p341_p3 }
   0xf   :  { %351 = shalt.err (!%p348_p7)
}
  0x10   :  { %s379_s16 = smov 128   ;;  %s380_s17 = smov 8  }
  0x11   :  { %19 = dma.hbm_to_vmem [thread:$0]  %s535_s0, 1536, %s14_s7, [#allocation3], %s379_s16, %s379_s16, %s380_s17  }
  0x12   :  { %374 = dma.done.wait [#allocation3], 1536  }
  0x13   :  { %375 = vsyncadd [#allocation3], 4294965760  ;;  %v45_v0 = vlaneseq  ;;  %v23_v5 = vld [vmem:[#allocation2] sm:$0xff]  ;;  %v24_v6 = vld [vmem:[#allocation2 + $0x8] sm:$0xff]  ;;  %s381_s0 = smov 16   ;;  %vm151_vm6 = vcmask 1047680  }
  0x14   :  { %v26_v7 = vld [vmem:[#allocation2 + $0x38] sm:$0xff]  ;;  %v28_v8 = vld [vmem:[#allocation2 + $0x10] sm:$0xff]  ;;  %v31_v10 = vld [vmem:[#allocation2 + $0x48] sm:$0xff]  ;;  %s382_s20 = smov 113   ;;  %s383_s21 = smov 127   ;;  %vm301_vm9 = vcmask 130048  }
  0x15   :  { %v46_v1 = vshrl.u32 %v45_v0, 7  ;;  %v29_v9 = vld [vmem:[#allocation2 + $0x18] sm:$0xff]  ;;  %v32_v13 = vadd.f32 %v28_v8, %v23_v5  ;;  %v35_v15 = vadd.f32 %v31_v10, %v26_v7  ;;  %v37_v16 = vld [vmem:[#allocation2 + $0x20] sm:$0xff]  ;;  %v38_v17 = vld [vmem:[#allocation2 + $0x28] sm:$0xff]  ;;  %v99_v41 = vand.u32 127, %v45_v0  ;;  %s384_s22 = smov [#allocation5]  }
  0x16   :  { %v33_v14 = vadd.f32 %v29_v9, %v24_v6  ;;  %v40_v18 = vld [vmem:[#allocation2 + $0x58] sm:$0xff]  ;;  %v25_v19 = vld [vmem:[#allocation2 + $0x30] sm:$0xff]  ;;  %v30_v20 = vld [vmem:[#allocation2 + $0x40] sm:$0xff]  ;;  %s311_s23 = sshll.u32 %s384_s22, 4  ;;  %s312_s23 = int_to_ptr.vmem [resolvable:$true] %s311_s23 }
  0x17   :  { %v48_v2 = vadd.s32 16, %v46_v1  ;;  %v47_v3 = vadd.s32 8, %v46_v1  ;;  %v49_v4 = vadd.s32 24, %v46_v1  ;;  %v54_v11 = vand.u32 15, %v46_v1  ;;  %v39_v27 = vld [vmem:[#allocation2 + $0x50] sm:$0xff]  ;;  %s352_s24 = scalar_lea.vmem %s312_s23, 512  ;;  %p357_p9 = scmp.lt.s32.totalorder %s312_s23, %s312_s23 }
  0x18   :  { %v41_v23 = vadd.f32 %v37_v16, %v32_v13  ;;  %v42_v24 = vadd.f32 %v38_v17, %v33_v14  ;;  %v44_v25 = vadd.f32 %v40_v18, %v35_v15  ;;  %v34_v26 = vadd.f32 %v30_v20, %v25_v19  ;;  %p353_p8 = scmp.ne.s32.totalorder %s312_s23, %s352_s24  ;;  %p358_p10 = scmp.lt.s32.totalorder %s352_s24, %s352_s24 }
  0x19   :  { %v68_v12 = vand.u32 15, %v48_v2  ;;  %v61_v21 = vand.u32 15, %v47_v3  ;;  %v75_v22 = vand.u32 15, %v49_v4  ;;  %vm411_vm0 = vcmp.eq.s32.totalorder %v54_v11, 0 }
  0x1a   :  { %vm108_vm1 = vcmp.lt.s32.totalorder %v46_v1, 1  ;;  %vm125_vm2 = vcmp.lt.s32.totalorder %v46_v1, 7  ;;  %v104_v30 = vrot.slane %v41_v23, 7  ;;  %v107_v31 = vrot.slane %v44_v25, 7  ;;  %p359_p11 = por %p358_p10, %p357_p9 }
  0x1b   :  { %vm415_vm3 = vcmp.eq.s32.totalorder %v68_v12, 0  ;;  %v121_v32 = vrot.slane %v41_v23, 1  ;;  %v122_v33 = vrot.slane %v42_v24, 1  ;;  %v43_v34 = vadd.f32 %v39_v27, %v34_v26 }
  0x1c   :  { %v105_v35 = vrot.slane %v42_v24, 7  ;;  %v124_v36 = vrot.slane %v44_v25, 1  ;;  %v134_v37 = vmul.f32 2.0, %v41_v23  ;;  %v112_v38 = vsel %vm108_vm1, %v107_v31, %v104_v30  ;;  %p360_p12 = pnand %p359_p11, %p353_p8 }
  0x1d   :  { %v128_v39 = vsel %vm125_vm2, %v121_v32, %v122_v33  ;;  %vm421_vm4 = vcmp.eq.s32.totalorder %v61_v21, 15  ;;  %vm425_vm5 = vcmp.eq.s32.totalorder %v75_v22, 15  ;;  %v113_v42 = vsel %vm411_vm0, 0.0, %v112_v38 }
  0x1e   :  { %v106_v43 = vrot.slane %v43_v34, 7  ;;  %v123_v44 = vrot.slane %v43_v34, 1  ;;  %v135_v45 = vmul.f32 2.0, %v42_v24  ;;  %v431_v46 = vsub.f32 %v113_v42, %v128_v39 }
  0x1f   :  { %v111_v47 = vsel %vm108_vm1, %v104_v30, %v105_v35  ;;  %v129_v48 = vsel %vm125_vm2, %v124_v36, %v121_v32  ;;  %v138_v49 = vadd.f32 %v134_v37, %v113_v42  ;;  %v136_v53 = vmul.f32 2.0, %v43_v34 }
  0x20   :  { %v110_v50 = vsel %vm108_vm1, %v105_v35, %v106_v43  ;;  %v126_v51 = vsel %vm125_vm2, %v123_v44, %v124_v36  ;;  %v127_v52 = vsel %vm125_vm2, %v122_v33, %v123_v44  ;;  %213 = vrot.lane.b32.xlu0 %v431_v46, %s381_s0  ;;  %v109_v56 = vsel %vm108_vm1, %v106_v43, %v107_v31 }
  0x21   :  { %v115_v54 = vsel %vm415_vm3, 0.0, %v110_v50  ;;  %v131_v55 = vsel %vm421_vm4, 0.0, %v127_v52  ;;  %v133_v57 = vsel %vm425_vm5, 0.0, %v129_v48  ;;  %v139_v61 = vadd.f32 %v135_v45, %v111_v47 }
  0x22   :  { %v447_v58 = vsub.f32 %v115_v54, %v126_v51  ;;  %v449_v59 = vsub.f32 %v111_v47, %v131_v55  ;;  %v453_v60 = vsub.f32 %v109_v56, %v133_v57  ;;  %v137_v62 = vmul.f32 2.0, %v44_v25 }
  0x23   :  { %v142_v63 = vadd.f32 %v138_v49, %v128_v39  ;;  %v140_v1 = vadd.f32 %v136_v53, %v115_v54  ;;  %v143_v2 = vadd.f32 %v139_v61, %v131_v55  ;;  %vm150_vm7 = vcmp.eq.s32.totalorder %v99_v41, 0 }
  0x24   :  { %219 = vrot.lane.b32.xlu1 %v447_v58, %s381_s0  ;;  %216 = vrot.lane.b32.xlu0 %v449_v59, %s381_s0  ;;  %v141_v3 = vadd.f32 %v137_v62, %v109_v56  ;;  %v277_v47 = vmul.f32 2.0, %v431_v46  ;;  %vm196_vm8 = vcmp.eq.s32.totalorder %v99_v41, 15  ;;  %v278_v53 = vmul.f32 2.0, %v449_v59 }
  0x25   :  { %v144_v4 = vadd.f32 %v140_v1, %v126_v51  ;;  %v279_v1 = vmul.f32 2.0, %v447_v58 }
  0x26   :  { %v145_v5 = vadd.f32 %v141_v3, %v133_v57 }
  0x28   :  { %222 = vrot.lane.b32.xlu1 %v453_v60, %s381_s0  ;;  %152 = vrot.lane.b32.xlu0 %v142_v63, %s381_s0 }
  0x2c   :  { %155 = vrot.lane.b32.xlu1 %v143_v2, %s381_s0  ;;  %158 = vrot.lane.b32.xlu0 %v144_v4, %s381_s0 }
  0x30   :  { %161 = vrot.lane.b32.xlu1 %v145_v5, %s381_s0 }
  0x92   :  { %v214_v6 = vpop.permute.xlu0 %213 }
  0x93   :  { %v215_v7 = vsel %vm151_vm6, %v214_v6, %v431_v46 }
  0x94   :  { %225 = vrot.lane.b32.xlu0 %v215_v7, %s381_s0 }
  0x96   :  { %v220_v8 = vpop.permute.xlu1 %219  ;;  %v217_v9 = vpop.permute.xlu0 %216 }
  0x97   :  { %v221_v10 = vsel %vm151_vm6, %v220_v8, %v447_v58  ;;  %v218_v11 = vsel %vm151_vm6, %v217_v9, %v449_v59 }
  0x98   :  { %229 = vrot.lane.b32.xlu0 %v221_v10, %s381_s0  ;;  %227 = vrot.lane.b32.xlu1 %v218_v11, %s381_s0 }
  0x9a   :  { %v223_v12 = vpop.permute.xlu1 %222  ;;  %v153_v14 = vpop.permute.xlu0 %152 }
  0x9b   :  { %v224_v13 = vsel %vm151_vm6, %v223_v12, %v453_v60  ;;  %v154_v15 = vsel %vm151_vm6, %v153_v14, %v142_v63  ;;  %v280_v12 = vmul.f32 2.0, %v453_v60 }
  0x9c   :  { %231 = vrot.lane.b32.xlu1 %v224_v13, %s381_s0  ;;  %164 = vrot.lane.b32.xlu0 %v154_v15, %s381_s0 }
  0x9e   :  { %v156_v16 = vpop.permute.xlu1 %155  ;;  %v159_v17 = vpop.permute.xlu0 %158 }
  0x9f   :  { %v157_v18 = vsel %vm151_vm6, %v156_v16, %v143_v2  ;;  %v160_v19 = vsel %vm151_vm6, %v159_v17, %v144_v4 }
  0xa0   :  { %168 = vrot.lane.b32.xlu0 %v160_v19, %s381_s0  ;;  %166 = vrot.lane.b32.xlu1 %v157_v18, %s381_s0 }
  0xa2   :  { %v162_v20 = vpop.permute.xlu1 %161 }
  0xa3   :  { %v163_v21 = vsel %vm151_vm6, %v162_v20, %v145_v5 }
  0xa4   :  { %170 = vrot.lane.b32.xlu1 %v163_v21, %s381_s0 }
 0x106   :  { %v226_v22 = vpop.permute.xlu0 %225 }
 0x107   :  { %v233_v23 = vsel %vm151_vm6, %v226_v22, %v431_v46 }
 0x108   :  { %241 = vrot.lane.b32.xlu0 %v233_v23, %s382_s20 }
 0x10a   :  { %v230_v24 = vpop.permute.xlu0 %229  ;;  %v228_v25 = vpop.permute.xlu1 %227 }
 0x10b   :  { %v235_v26 = vsel %vm151_vm6, %v230_v24, %v447_v58  ;;  %v234_v27 = vsel %vm151_vm6, %v228_v25, %v449_v59 }
 0x10c   :  { %245 = vrot.lane.b32.xlu0 %v235_v26, %s382_s20  ;;  %243 = vrot.lane.b32.xlu1 %v234_v27, %s382_s20 }
 0x10e   :  { %v232_v28 = vpop.permute.xlu1 %231  ;;  %v165_v29 = vpop.permute.xlu0 %164 }
 0x10f   :  { %v236_v30 = vsel %vm151_vm6, %v232_v28, %v453_v60  ;;  %v172_v31 = vsel %vm151_vm6, %v165_v29, %v142_v63 }
 0x110   :  { %257 = vrot.lane.b32.xlu0 %v233_v23, %s383_s21  ;;  %247 = vrot.lane.b32.xlu1 %v236_v30, %s382_s20 }
 0x112   :  { %v169_v32 = vpop.permute.xlu0 %168  ;;  %v167_v33 = vpop.permute.xlu1 %166 }
 0x113   :  { %v174_v34 = vsel %vm151_vm6, %v169_v32, %v144_v4  ;;  %v173_v35 = vsel %vm151_vm6, %v167_v33, %v143_v2 }
 0x114   :  { %180 = vrot.lane.b32.xlu0 %v172_v31, %s382_s20  ;;  %259 = vrot.lane.b32.xlu1 %v234_v27, %s383_s21 }
 0x116   :  { %v171_v36 = vpop.permute.xlu1 %170 }
 0x117   :  { %v175_v37 = vsel %vm151_vm6, %v171_v36, %v145_v5 }
 0x118   :  { %184 = vrot.lane.b32.xlu0 %v174_v34, %s382_s20  ;;  %182 = vrot.lane.b32.xlu1 %v173_v35, %s382_s20 }
 0x11c   :  { %197 = vrot.lane.b32.xlu0 %v172_v31, %s383_s21  ;;  %186 = vrot.lane.b32.xlu1 %v175_v37, %s382_s20 }
 0x120   :  { %201 = vrot.lane.b32.xlu0 %v174_v34, %s383_s21  ;;  %199 = vrot.lane.b32.xlu1 %v173_v35, %s383_s21 }
 0x124   :  { %261 = vrot.lane.b32.xlu0 %v235_v26, %s383_s21  ;;  %203 = vrot.lane.b32.xlu1 %v175_v37, %s383_s21 }
 0x128   :  { %263 = vrot.lane.b32.xlu1 %v236_v30, %s383_s21 }
 0x17a   :  { %v242_v38 = vpop.permute.xlu0 %241 }
 0x17b   :  { %v253_v48 = vsel %vm150_vm7, 0.0, %v242_v38 }
 0x17c   :  { %v281_v52 = vadd.f32 %v277_v47, %v253_v48 }
 0x17e   :  { %v246_v39 = vpop.permute.xlu0 %245  ;;  %v244_v40 = vpop.permute.xlu1 %243 }
 0x17f   :  { %v254_v54 = vsel %vm150_vm7, 0.0, %v244_v40  ;;  %v255_v6 = vsel %vm150_vm7, 0.0, %v246_v39 }
 0x180   :  { %v282_v62 = vadd.f32 %v278_v53, %v254_v54  ;;  %v283_v13 = vadd.f32 %v279_v1, %v255_v6 }
 0x182   :  { %v258_v42 = vpop.permute.xlu0 %257  ;;  %v248_v43 = vpop.permute.xlu1 %247 }
 0x183   :  { %v269_v51 = vsel %vm196_vm8, 0.0, %v258_v42  ;;  %v256_v19 = vsel %vm150_vm7, 0.0, %v248_v43 }
 0x184   :  { %v285_v0 = vadd.f32 %v281_v52, %v269_v51  ;;  %v284_v24 = vadd.f32 %v280_v12, %v256_v19 }
 0x186   :  { %v181_v44 = vpop.permute.xlu0 %180  ;;  %v260_v45 = vpop.permute.xlu1 %259  ;;  %v293_v2 = vand.u32 2147483647, %v285_v0 }
 0x187   :  { %v192_v57 = vsel %vm150_vm7, 0.0, %v181_v44  ;;  %v270_v61 = vsel %vm196_vm8, 0.0, %v260_v45 }
 0x188   :  { %v286_v3 = vadd.f32 %v282_v62, %v270_v61 }
 0x18a   :  { %v185_v49 = vpop.permute.xlu0 %184  ;;  %v183_v50 = vpop.permute.xlu1 %182  ;;  %v294_v14 = vand.u32 2147483647, %v286_v3 }
 0x18b   :  { %v193_v7 = vsel %vm150_vm7, 0.0, %v183_v50  ;;  %v194_v58 = vsel %vm150_vm7, 0.0, %v185_v49 }
 0x18e   :  { %v198_v55 = vpop.permute.xlu0 %197  ;;  %v187_v56 = vpop.permute.xlu1 %186 }
 0x18f   :  { %v209_v46 = vsel %vm196_vm8, 0.0, %v198_v55  ;;  %v195_v60 = vsel %vm150_vm7, 0.0, %v187_v56 }
 0x190   :  { %v273_v63 = vsub.f32 %v192_v57, %v209_v46 }
 0x192   :  { %v289_v4 = vand.u32 2147483647, %v273_v63  ;;  %v202_v5 = vpop.permute.xlu0 %201  ;;  %v200_v59 = vpop.permute.xlu1 %199 }
 0x193   :  { %v211_v8 = vsel %vm196_vm8, 0.0, %v202_v5  ;;  %v210_v9 = vsel %vm196_vm8, 0.0, %v200_v59 }
 0x194   :  { %v297_v10 = vadd.f32 %v293_v2, %v289_v4  ;;  %v274_v11 = vsub.f32 %v193_v7, %v210_v9  ;;  %v275_v15 = vsub.f32 %v194_v58, %v211_v8 }
 0x196   :  { %v290_v16 = vand.u32 2147483647, %v274_v11  ;;  %v262_v17 = vpop.permute.xlu0 %261  ;;  %v204_v18 = vpop.permute.xlu1 %203  ;;  %302 = vst.msk [vmem:[#allocation5] sm:$0xff] %vm301_vm9, %v297_v10  ;;  %v291_v25 = vand.u32 2147483647, %v275_v15 }
 0x197   :  { %v271_v20 = vsel %vm196_vm8, 0.0, %v262_v17  ;;  %v212_v21 = vsel %vm196_vm8, 0.0, %v204_v18 }
 0x198   :  { %v298_v22 = vadd.f32 %v294_v14, %v290_v16  ;;  %v287_v23 = vadd.f32 %v283_v13, %v271_v20  ;;  %v276_v27 = vsub.f32 %v195_v60, %v212_v21 }
 0x19a   :  { %v295_v26 = vand.u32 2147483647, %v287_v23  ;;  %v264_v28 = vpop.permute.xlu1 %263  ;;  %303 = vst.msk [vmem:[#allocation5 + $0x8] sm:$0xff] %vm301_vm9, %v298_v22  ;;  %v292_v32 = vand.u32 2147483647, %v276_v27 }
 0x19b   :  { %v272_v29 = vsel %vm196_vm8, 0.0, %v264_v28 }
 0x19c   :  { %v299_v30 = vadd.f32 %v295_v26, %v291_v25  ;;  %v288_v31 = vadd.f32 %v284_v24, %v272_v29 }
 0x19e   :  { %v296_v33 = vand.u32 2147483647, %v288_v31  ;;  %304 = vst.msk [vmem:[#allocation5 + $0x10] sm:$0xff] %vm301_vm9, %v299_v30 }
 0x1a0   :  { %v300_v34 = vadd.f32 %v296_v33, %v292_v32 }
 0x1a2   :  { %305 = vst.msk [vmem:[#allocation5 + $0x18] sm:$0xff] %vm301_vm9, %v300_v34 }
 0x1a3   :  { %363 = shalt.err (!%p360_p12)
}
 0x1a4   :  { %s364_s27 = scalar_lea.hbm %s536_s1, 512 }
 0x1a5   :  { %p365_p13 = scmp.ne.s32.totalorder %s536_s1, %s364_s27  ;;  %p368_p0 = scmp.lt.u32.totalorder %s364_s27, %s536_s1 }
 0x1a7   :  { %p370_p1 = pnand %p368_p0, %p365_p13 }
 0x1a9   :  { %373 = shalt.err (!%p370_p1)
}
 0x1aa   :  { %317 = dma.vmem_to_hbm [thread:$0]  %s312_s23, 512, %s536_s1, [#allocation4], %s379_s16, %s379_s16, %s380_s17  }
 0x1ab   :  { %376 = dma.done.wait [#allocation4], 512  }
 0x1ac   :  { %377 = vsyncadd [#allocation4], 4294966784 }
 0x1ad   :  { %321 = vsyncpa [#allocation3], 1 }
 0x1ae   :  { %322 = vsyncpa [#allocation4], 1 }

</bundles_post_ra>
